<compile_context>
chip_gen: v7x
topology: tpu7x:2x2x1
jax: 0.10.0
libtpu: 0.0.40
codegen_flags: <defaults>
</compile_context>

<pallas_src>
import functools

import jax
import jax.numpy as jnp
from jax.experimental import pallas as pl
from jax.experimental.pallas import tpu as pltpu


def _round_up(x, m):
    return ((x + m - 1) // m) * m


def _multi_dilation_kernel(x_ref, w1_ref, b1_ref, w2_ref, b2_ref,
                           o1_ref, o2_ref, xpad_ref, slab_ref,
                           *, B, HWp, W, Cin_pad):
    """Two fused conv3x3(valid, d=1/2) + BN(bias) + ReLU branches per batch tile.

    x_ref:       (Cin_pad, B*HWp)      VMEM, bf16  (channels on sublanes,
                                                    flattened (b,y,x) on lanes)
    w{1,2}_ref:  (Cout, 9*Cin_pad)     VMEM, bf16  (BN scale folded; tap-major,
                                                    channel-minor columns)
    b{1,2}_ref:  (Cout, 1)             VMEM, f32   (beta - mean*scale)
    o{1,2}_ref:  (B, Cout, HWp)        VMEM, bf16  (full H*W map; wrapper crops)
    xpad_ref:    (Cin_pad, B*HWp+tail) VMEM scratch, bf16 (lane-padded staging)
    slab_ref:    (9*Cin_pad, B*HWp)    VMEM scratch, bf16 (shared im2col slab)
    """
    M = B * HWp
    tail = xpad_ref.shape[1] - M

    # Stage the input once; the tail padding makes every shifted tap window an
    # in-bounds, static-offset load (no masked stores, no OOB reads).
    xpad_ref[:, :M] = x_ref[...]
    xpad_ref[:, M:] = jnp.zeros((Cin_pad, tail), dtype=xpad_ref.dtype)

    def branch(w_ref, b_ref, o_ref, dil):
        # im2col: 9 dilated taps -> sublane-aligned row blocks of the shared slab.
        for dy in range(3):
            for dx in range(3):
                tap = dy * 3 + dx
                s = dil * (dy * W + dx)
                slab_ref[tap * Cin_pad:(tap + 1) * Cin_pad, :] = xpad_ref[:, s:s + M]
        # Single MXU contraction, nn-form: (Cout, K) @ (K, M) -> (Cout, M), f32 acc.
        acc = jnp.dot(w_ref[...], slab_ref[...], preferred_element_type=jnp.float32)
        # Epilogue: folded-BN bias + ReLU (f32), bf16 writeback.
        y = jnp.maximum(acc + b_ref[...], 0.0).astype(o_ref.dtype)
        for b in range(B):  # aligned lane slices: HWp is a multiple of 128
            o_ref[b] = y[:, b * HWp:(b + 1) * HWp]

    branch(w1_ref, b1_ref, o1_ref, 1)
    branch(w2_ref, b2_ref, o2_ref, 2)


def _fold_bn(params, eps, cin_pad):
    """Fold eval-mode BN into a (Cout, 9*cin_pad) bf16 weight and (Cout,1) f32 bias."""
    w = params["w"].astype(jnp.float32)                      # (Cout, Cin, 3, 3)
    scale = params["gamma"] / jnp.sqrt(params["var"] + eps)
    bias = params["beta"] - params["mean"] * scale
    w = w * scale[:, None, None, None]                       # BN scale folded into conv
    cout, cin = w.shape[0], w.shape[1]
    w = jnp.pad(w, ((0, 0), (0, cin_pad - cin), (0, 0), (0, 0)))
    # (Cout, Cin_pad, 3, 3) -> (Cout, 3, 3, Cin_pad) -> (Cout, 9*Cin_pad):
    # tap-major, channel-minor, matching the slab row order in the kernel.
    w_t = jnp.transpose(w, (0, 2, 3, 1)).reshape(cout, 9 * cin_pad)
    return w_t.astype(jnp.bfloat16), bias.reshape(cout, 1).astype(jnp.float32)


def _pick_batch_tile(N, HWp, Cin_pad, Cout, tail):
    """Largest batch tile with a lane-wide matmul but a small per-step VMEM footprint."""
    B = max(1, min(N, max(1, 512 // HWp)))

    def step_bytes(b):
        m = b * HWp
        return (2 * Cin_pad * m * 2                  # double-buffered input block (bf16)
                + Cin_pad * (m + tail) * 2           # lane-padded staging scratch
                + 9 * Cin_pad * m * 2                # shared im2col slab scratch
                + 2 * 2 * Cout * m * 2               # two double-buffered bf16 outputs
                + 2 * Cout * m * 4                   # f32 matmul/epilogue temporaries
                + 2 * 2 * Cout * (9 * Cin_pad * 2 + 4))  # resident weights/biases

    while B > 1 and step_bytes(B) > 8 * 1024 * 1024:
        B -= 1
    return B


def multi_dilation_pair(x_nchw, params_d1, params_d2, *, eps=1e-5):
    """Both dilation branches (d=1 and d=2) for one input tensor, in ONE pallas_call.

    Returns bf16 NCHW feature maps of shapes (N, Cout, H-2, W-2) and (N, Cout, H-4, W-4).
    """
    N, Cin, H, W = x_nchw.shape
    assert H >= 5 and W >= 5, "dilation-2 3x3 conv requires spatial dims >= 5"
    Cout = params_d1["w"].shape[0]

    Cin_pad = _round_up(Cin, 16)             # bf16 sublane pack -> aligned slab stores
    HW = H * W
    HWp = _round_up(HW, 128)                 # per-image lane stride (aligned slices)
    K9 = 9 * Cin_pad
    tail = _round_up(4 * W + 4, 128)         # >= max tap shift (dy=dx=2, d=2)
    B = _pick_batch_tile(N, HWp, Cin_pad, Cout, tail)
    Np = _round_up(N, B)
    M = B * HWp

    w1, b1 = _fold_bn(params_d1, eps, Cin_pad)
    w2, b2 = _fold_bn(params_d2, eps, Cin_pad)

    # NCHW -> (Cin_pad, Np*HWp): channels on sublanes, flattened (b, y, x) on lanes.
    xb = x_nchw.astype(jnp.bfloat16).reshape(N, Cin, HW)
    xb = jnp.pad(xb, ((0, Np - N), (0, Cin_pad - Cin), (0, HWp - HW)))
    xb = jnp.transpose(xb, (1, 0, 2)).reshape(Cin_pad, Np * HWp)

    kernel = functools.partial(_multi_dilation_kernel,
                               B=B, HWp=HWp, W=W, Cin_pad=Cin_pad)

    flops = int(4 * Cout * K9 * Np * HWp)    # 2 branches x 2*M*K*Cout
    bytes_accessed = int(xb.size * 2 + (w1.size + w2.size) * 2
                         + (b1.size + b2.size) * 4 + 2 * Np * Cout * HWp * 2)

    o1, o2 = pl.pallas_call(
        kernel,
        grid=(Np // B,),
        in_specs=[
            pl.BlockSpec((Cin_pad, M), lambda n: (0, n)),      # activation batch tile
            pl.BlockSpec((Cout, K9), lambda n: (0, 0)),        # weights/biases resident
            pl.BlockSpec((Cout, 1), lambda n: (0, 0)),
            pl.BlockSpec((Cout, K9), lambda n: (0, 0)),
            pl.BlockSpec((Cout, 1), lambda n: (0, 0)),
        ],
        out_specs=[
            pl.BlockSpec((B, Cout, HWp), lambda n: (n, 0, 0)),
            pl.BlockSpec((B, Cout, HWp), lambda n: (n, 0, 0)),
        ],
        out_shape=[
            jax.ShapeDtypeStruct((Np, Cout, HWp), jnp.bfloat16),
            jax.ShapeDtypeStruct((Np, Cout, HWp), jnp.bfloat16),
        ],
        scratch_shapes=[
            pltpu.VMEM((Cin_pad, M + tail), jnp.bfloat16),     # lane-padded input stage
            pltpu.VMEM((K9, M), jnp.bfloat16),                 # shared im2col slab
        ],
        compiler_params=pltpu.CompilerParams(
            dimension_semantics=("parallel",),
            vmem_limit_bytes=32 * 1024 * 1024,
        ),
        cost_estimate=pl.CostEstimate(flops=flops, transcendentals=0,
                                      bytes_accessed=bytes_accessed),
    )(xb, w1, b1, w2, b2)

    def crop(o, dil):
        ho, wo = H - 2 * dil, W - 2 * dil
        # Drop batch/spatial padding, un-flatten, crop to the valid conv output.
        return o[:N, :, :HW].reshape(N, Cout, H, W)[:, :, :ho, :wo]

    return crop(o1, 1), crop(o2, 2)


def init_branch_params(key, in_channels, hidden):
    """Deterministic params for one Conv2d(no bias) + BatchNorm2d branch."""
    kw, kg, kb, km, kv = jax.random.split(key, 5)
    w = jax.random.normal(kw, (hidden, in_channels, 3, 3), jnp.float32) * 0.1
    gamma = 1.0 + 0.05 * jax.random.normal(kg, (hidden,), jnp.float32)
    beta = 0.05 * jax.random.normal(kb, (hidden,), jnp.float32)
    mean = 0.05 * jax.random.normal(km, (hidden,), jnp.float32)
    var = jnp.abs(1.0 + 0.05 * jax.random.normal(kv, (hidden,), jnp.float32))
    return dict(w=w, gamma=gamma, beta=beta, mean=mean, var=var)


class MultiDilationPallas:
    """Pallas equivalent of the PyTorch MultiDilation module (inference semantics)."""

    def __init__(self, in_channels, hidden, key):
        k1, k2, k3, k4 = jax.random.split(key, 4)
        self.xf11 = init_branch_params(k1, in_channels, hidden)
        self.xf22 = init_branch_params(k2, in_channels, hidden)
        self.zf11 = init_branch_params(k3, in_channels, hidden)
        self.zf22 = init_branch_params(k4, in_channels, hidden)

    def __call__(self, z, x):
        zf11, zf22 = multi_dilation_pair(z, self.zf11, self.zf22)   # one call for z
        xf11, xf22 = multi_dilation_pair(x, self.xf11, self.xf22)   # one call for x
        return ([zf11, zf22], [xf11, xf22])


def _reference_branch(params, x_nchw, dilation, eps=1e-5):
    """Pure-JAX reference (bf16-rounded operands and bf16 output, mirrors the kernel)."""
    w = params["w"].astype(jnp.float32)
    scale = params["gamma"] / jnp.sqrt(params["var"] + eps)
    bias = params["beta"] - params["mean"] * scale
    w_folded = (w * scale[:, None, None, None]).astype(jnp.bfloat16).astype(jnp.float32)
    x_f = x_nchw.astype(jnp.bfloat16).astype(jnp.float32)
    y = jax.lax.conv_general_dilated(
        x_f, w_folded, window_strides=(1, 1), padding="VALID",
        rhs_dilation=(dilation, dilation),
        dimension_numbers=("NCHW", "OIHW", "NCHW"),
        precision=jax.lax.Precision.HIGHEST)
    y = jnp.maximum(y + bias[None, :, None, None], 0.0)
    return y.astype(jnp.bfloat16).astype(jnp.float32)


if __name__ == "__main__":
    key = jax.random.PRNGKey(0)
    k_params, k_z, k_x = jax.random.split(key, 3)

    in_channels = 4
    hidden = 8
    # z is the (smaller) template, x the search region — both NCHW like PyTorch.
    z = jax.random.normal(k_z, (2, in_channels, 8, 8), jnp.float32)
    x = jax.random.normal(k_x, (2, in_channels, 16, 16), jnp.float32)

    model = MultiDilationPallas(in_channels, hidden, k_params)
    (zf11, zf22), (xf11, xf22) = model(z, x)
    for t in (zf11, zf22, xf11, xf22):
        jax.block_until_ready(t)

    # shape sanity: conv3x3 d=1 -> H-2, d=2 -> H-4
    assert zf11.shape == (2, hidden, 6, 6)
    assert zf22.shape == (2, hidden, 4, 4)
    assert xf11.shape == (2, hidden, 14, 14)
    assert xf22.shape == (2, hidden, 12, 12)

    # numerical sanity vs. pure-JAX reference (both bf16-rounded at the output)
    checks = [
        (zf11, _reference_branch(model.zf11, z, 1)),
        (zf22, _reference_branch(model.zf22, z, 2)),
        (xf11, _reference_branch(model.xf11, x, 1)),
        (xf22, _reference_branch(model.xf22, x, 2)),
    ]
    for got, want in checks:
        err = float(jnp.max(jnp.abs(got.astype(jnp.float32) - want)))
        assert err < 3e-2, f"max abs err {err}"

    print("KERNEL_OK")
</pallas_src>

<mosaic_0001>
module attributes {stable_mosaic.version = 11 : i64} {
  func.func @_multi_dilation_kernel(%arg0: i32, %arg1: memref<16x256xbf16, #tpu.memory_space<vmem>>, %arg2: memref<8x144xbf16, #tpu.memory_space<vmem>>, %arg3: memref<8x1xf32, #tpu.memory_space<vmem>>, %arg4: memref<8x144xbf16, #tpu.memory_space<vmem>>, %arg5: memref<8x1xf32, #tpu.memory_space<vmem>>, %arg6: memref<2x8x128xbf16, #tpu.memory_space<vmem>>, %arg7: memref<2x8x128xbf16, #tpu.memory_space<vmem>>, %arg8: memref<16x384xbf16, #tpu.memory_space<vmem>>, %arg9: memref<144x256xbf16, #tpu.memory_space<vmem>>) attributes {dimension_semantics = [#tpu.dimension_semantics<parallel>], iteration_bounds = array<i64: 1>, scalar_prefetch = 0 : i64, scratch_operands = 2 : i64, tpu.core_type = #tpu.core_type<tc>, window_params = [{transform_indices = @transform_0, window_bounds = array<i64: 16, 256>}, {pipeline_mode = #tpu.pipeline_mode<synchronous>, transform_indices = @transform_1, window_bounds = array<i64: 8, 144>}, {pipeline_mode = #tpu.pipeline_mode<synchronous>, transform_indices = @transform_2, window_bounds = array<i64: 8, 1>}, {pipeline_mode = #tpu.pipeline_mode<synchronous>, transform_indices = @transform_3, window_bounds = array<i64: 8, 144>}, {pipeline_mode = #tpu.pipeline_mode<synchronous>, transform_indices = @transform_4, window_bounds = array<i64: 8, 1>}, {transform_indices = @transform_5, window_bounds = array<i64: 2, 8, 128>}, {transform_indices = @transform_6, window_bounds = array<i64: 2, 8, 128>}]} {
    %c0 = arith.constant 0 : index
    %c0_0 = arith.constant 0 : index
    %0 = vector.load %arg1[%c0, %c0_0] : memref<16x256xbf16, #tpu.memory_space<vmem>>, vector<16x256xbf16>
    %c0_1 = arith.constant 0 : index
    %c0_2 = arith.constant 0 : index
    %1 = vector.load %arg8[%c0_1, %c0_2] : memref<16x384xbf16, #tpu.memory_space<vmem>>, vector<16x256xbf16>
    tpu.vector_store %arg8[%c0_1, %c0_2], %0 {strides = array<i32>} : memref<16x384xbf16, #tpu.memory_space<vmem>>, vector<16x256xbf16>,
    %cst = arith.constant 0.000000e+00 : bf16
    %2 = vector.broadcast %cst : bf16 to vector<16x128xbf16>
    %c0_3 = arith.constant 0 : index
    %c256 = arith.constant 256 : index
    %3 = vector.load %arg8[%c0_3, %c256] : memref<16x384xbf16, #tpu.memory_space<vmem>>, vector<16x128xbf16>
    tpu.vector_store %arg8[%c0_3, %c256], %2 {strides = array<i32>} : memref<16x384xbf16, #tpu.memory_space<vmem>>, vector<16x128xbf16>,
    %c0_4 = arith.constant 0 : index
    %c0_5 = arith.constant 0 : index
    %4 = vector.load %arg8[%c0_4, %c0_5] : memref<16x384xbf16, #tpu.memory_space<vmem>>, vector<16x256xbf16>
    %c0_6 = arith.constant 0 : index
    %c0_7 = arith.constant 0 : index
    %5 = vector.load %arg9[%c0_6, %c0_7] : memref<144x256xbf16, #tpu.memory_space<vmem>>, vector<16x256xbf16>
    tpu.vector_store %arg9[%c0_6, %c0_7], %4 {strides = array<i32>} : memref<144x256xbf16, #tpu.memory_space<vmem>>, vector<16x256xbf16>,
    %c0_8 = arith.constant 0 : index
    %c1 = arith.constant 1 : index
    %6 = vector.load %arg8[%c0_8, %c1] : memref<16x384xbf16, #tpu.memory_space<vmem>>, vector<16x256xbf16>
    %c16 = arith.constant 16 : index
    %c0_9 = arith.constant 0 : index
    %7 = vector.load %arg9[%c16, %c0_9] : memref<144x256xbf16, #tpu.memory_space<vmem>>, vector<16x256xbf16>
    tpu.vector_store %arg9[%c16, %c0_9], %6 {strides = array<i32>} : memref<144x256xbf16, #tpu.memory_space<vmem>>, vector<16x256xbf16>,
    %c0_10 = arith.constant 0 : index
    %c2 = arith.constant 2 : index
    %8 = vector.load %arg8[%c0_10, %c2] : memref<16x384xbf16, #tpu.memory_space<vmem>>, vector<16x256xbf16>
    %c32 = arith.constant 32 : index
    %c0_11 = arith.constant 0 : index
    %9 = vector.load %arg9[%c32, %c0_11] : memref<144x256xbf16, #tpu.memory_space<vmem>>, vector<16x256xbf16>
    tpu.vector_store %arg9[%c32, %c0_11], %8 {strides = array<i32>} : memref<144x256xbf16, #tpu.memory_space<vmem>>, vector<16x256xbf16>,
    %c0_12 = arith.constant 0 : index
    %c8 = arith.constant 8 : index
    %10 = vector.load %arg8[%c0_12, %c8] : memref<16x384xbf16, #tpu.memory_space<vmem>>, vector<16x256xbf16>
    %c48 = arith.constant 48 : index
    %c0_13 = arith.constant 0 : index
    %11 = vector.load %arg9[%c48, %c0_13] : memref<144x256xbf16, #tpu.memory_space<vmem>>, vector<16x256xbf16>
    tpu.vector_store %arg9[%c48, %c0_13], %10 {strides = array<i32>} : memref<144x256xbf16, #tpu.memory_space<vmem>>, vector<16x256xbf16>,
    %c0_14 = arith.constant 0 : index
    %c9 = arith.constant 9 : index
    %12 = vector.load %arg8[%c0_14, %c9] : memref<16x384xbf16, #tpu.memory_space<vmem>>, vector<16x256xbf16>
    %c64 = arith.constant 64 : index
    %c0_15 = arith.constant 0 : index
    %13 = vector.load %arg9[%c64, %c0_15] : memref<144x256xbf16, #tpu.memory_space<vmem>>, vector<16x256xbf16>
    tpu.vector_store %arg9[%c64, %c0_15], %12 {strides = array<i32>} : memref<144x256xbf16, #tpu.memory_space<vmem>>, vector<16x256xbf16>,
    %c0_16 = arith.constant 0 : index
    %c10 = arith.constant 10 : index
    %14 = vector.load %arg8[%c0_16, %c10] : memref<16x384xbf16, #tpu.memory_space<vmem>>, vector<16x256xbf16>
    %c80 = arith.constant 80 : index
    %c0_17 = arith.constant 0 : index
    %15 = vector.load %arg9[%c80, %c0_17] : memref<144x256xbf16, #tpu.memory_space<vmem>>, vector<16x256xbf16>
    tpu.vector_store %arg9[%c80, %c0_17], %14 {strides = array<i32>} : memref<144x256xbf16, #tpu.memory_space<vmem>>, vector<16x256xbf16>,
    %c0_18 = arith.constant 0 : index
    %c16_19 = arith.constant 16 : index
    %16 = vector.load %arg8[%c0_18, %c16_19] : memref<16x384xbf16, #tpu.memory_space<vmem>>, vector<16x256xbf16>
    %c96 = arith.constant 96 : index
    %c0_20 = arith.constant 0 : index
    %17 = vector.load %arg9[%c96, %c0_20] : memref<144x256xbf16, #tpu.memory_space<vmem>>, vector<16x256xbf16>
    tpu.vector_store %arg9[%c96, %c0_20], %16 {strides = array<i32>} : memref<144x256xbf16, #tpu.memory_space<vmem>>, vector<16x256xbf16>,
    %c0_21 = arith.constant 0 : index
    %c17 = arith.constant 17 : index
    %18 = vector.load %arg8[%c0_21, %c17] : memref<16x384xbf16, #tpu.memory_space<vmem>>, vector<16x256xbf16>
    %c112 = arith.constant 112 : index
    %c0_22 = arith.constant 0 : index
    %19 = vector.load %arg9[%c112, %c0_22] : memref<144x256xbf16, #tpu.memory_space<vmem>>, vector<16x256xbf16>
    tpu.vector_store %arg9[%c112, %c0_22], %18 {strides = array<i32>} : memref<144x256xbf16, #tpu.memory_space<vmem>>, vector<16x256xbf16>,
    %c0_23 = arith.constant 0 : index
    %c18 = arith.constant 18 : index
    %20 = vector.load %arg8[%c0_23, %c18] : memref<16x384xbf16, #tpu.memory_space<vmem>>, vector<16x256xbf16>
    %c128 = arith.constant 128 : index
    %c0_24 = arith.constant 0 : index
    %21 = vector.load %arg9[%c128, %c0_24] : memref<144x256xbf16, #tpu.memory_space<vmem>>, vector<16x256xbf16>
    tpu.vector_store %arg9[%c128, %c0_24], %20 {strides = array<i32>} : memref<144x256xbf16, #tpu.memory_space<vmem>>, vector<16x256xbf16>,
    %c0_25 = arith.constant 0 : index
    %c0_26 = arith.constant 0 : index
    %22 = vector.load %arg2[%c0_25, %c0_26] : memref<8x144xbf16, #tpu.memory_space<vmem>>, vector<8x144xbf16>
    %c0_27 = arith.constant 0 : index
    %c0_28 = arith.constant 0 : index
    %23 = vector.load %arg9[%c0_27, %c0_28] : memref<144x256xbf16, #tpu.memory_space<vmem>>, vector<144x256xbf16>
    %cst_29 = arith.constant dense<0.000000e+00> : vector<8x256xf32>
    %24 = tpu.matmul %22, %23, %cst_29 {dimension_numbers = #tpu.dot_dimension_numbers<[1], [0], [0], [1], [0, 0, 1, 1], [], []>} : vector<8x144xbf16>, vector<144x256xbf16>, vector<8x256xf32> -> vector<8x256xf32>
    %c0_30 = arith.constant 0 : index
    %c0_31 = arith.constant 0 : index
    %25 = vector.load %arg3[%c0_30, %c0_31] : memref<8x1xf32, #tpu.memory_space<vmem>>, vector<8x1xf32>
    %26 = vector.broadcast %25 : vector<8x1xf32> to vector<8x256xf32>
    %27 = arith.addf %24, %26 : vector<8x256xf32>
    %cst_32 = arith.constant 0.000000e+00 : f32
    %28 = vector.broadcast %cst_32 : f32 to vector<8x256xf32>
    %29 = arith.maximumf %27, %28 : vector<8x256xf32>
    %30 = arith.truncf %29 : vector<8x256xf32> to vector<8x256xbf16>
    %31 = vector.extract_strided_slice %30 {offsets = [0, 0], sizes = [8, 128], strides = [1, 1]} : vector<8x256xbf16> to vector<8x128xbf16>
    %c0_33 = arith.constant 0 : index
    %c0_34 = arith.constant 0 : index
    %c0_35 = arith.constant 0 : index
    %32 = vector.load %arg6[%c0_33, %c0_34, %c0_35] : memref<2x8x128xbf16, #tpu.memory_space<vmem>>, vector<1x8x128xbf16>
    %33 = vector.shape_cast %32 : vector<1x8x128xbf16> to vector<8x128xbf16>
    %34 = vector.shape_cast %31 : vector<8x128xbf16> to vector<1x8x128xbf16>
    tpu.vector_store %arg6[%c0_33, %c0_34, %c0_35], %34 {strides = array<i32>} : memref<2x8x128xbf16, #tpu.memory_space<vmem>>, vector<1x8x128xbf16>,
    %35 = vector.extract_strided_slice %30 {offsets = [0, 128], sizes = [8, 128], strides = [1, 1]} : vector<8x256xbf16> to vector<8x128xbf16>
    %c1_36 = arith.constant 1 : index
    %c0_37 = arith.constant 0 : index
    %c0_38 = arith.constant 0 : index
    %36 = vector.load %arg6[%c1_36, %c0_37, %c0_38] : memref<2x8x128xbf16, #tpu.memory_space<vmem>>, vector<1x8x128xbf16>
    %37 = vector.shape_cast %36 : vector<1x8x128xbf16> to vector<8x128xbf16>
    %38 = vector.shape_cast %35 : vector<8x128xbf16> to vector<1x8x128xbf16>
    tpu.vector_store %arg6[%c1_36, %c0_37, %c0_38], %38 {strides = array<i32>} : memref<2x8x128xbf16, #tpu.memory_space<vmem>>, vector<1x8x128xbf16>,
    %c0_39 = arith.constant 0 : index
    %c0_40 = arith.constant 0 : index
    %39 = vector.load %arg8[%c0_39, %c0_40] : memref<16x384xbf16, #tpu.memory_space<vmem>>, vector<16x256xbf16>
    %c0_41 = arith.constant 0 : index
    %c0_42 = arith.constant 0 : index
    %40 = vector.load %arg9[%c0_41, %c0_42] : memref<144x256xbf16, #tpu.memory_space<vmem>>, vector<16x256xbf16>
    tpu.vector_store %arg9[%c0_41, %c0_42], %39 {strides = array<i32>} : memref<144x256xbf16, #tpu.memory_space<vmem>>, vector<16x256xbf16>,
    %c0_43 = arith.constant 0 : index
    %c2_44 = arith.constant 2 : index
    %41 = vector.load %arg8[%c0_43, %c2_44] : memref<16x384xbf16, #tpu.memory_space<vmem>>, vector<16x256xbf16>
    %c16_45 = arith.constant 16 : index
    %c0_46 = arith.constant 0 : index
    %42 = vector.load %arg9[%c16_45, %c0_46] : memref<144x256xbf16, #tpu.memory_space<vmem>>, vector<16x256xbf16>
    tpu.vector_store %arg9[%c16_45, %c0_46], %41 {strides = array<i32>} : memref<144x256xbf16, #tpu.memory_space<vmem>>, vector<16x256xbf16>,
    %c0_47 = arith.constant 0 : index
    %c4 = arith.constant 4 : index
    %43 = vector.load %arg8[%c0_47, %c4] : memref<16x384xbf16, #tpu.memory_space<vmem>>, vector<16x256xbf16>
    %c32_48 = arith.constant 32 : index
    %c0_49 = arith.constant 0 : index
    %44 = vector.load %arg9[%c32_48, %c0_49] : memref<144x256xbf16, #tpu.memory_space<vmem>>, vector<16x256xbf16>
    tpu.vector_store %arg9[%c32_48, %c0_49], %43 {strides = array<i32>} : memref<144x256xbf16, #tpu.memory_space<vmem>>, vector<16x256xbf16>,
    %c0_50 = arith.constant 0 : index
    %c16_51 = arith.constant 16 : index
    %45 = vector.load %arg8[%c0_50, %c16_51] : memref<16x384xbf16, #tpu.memory_space<vmem>>, vector<16x256xbf16>
    %c48_52 = arith.constant 48 : index
    %c0_53 = arith.constant 0 : index
    %46 = vector.load %arg9[%c48_52, %c0_53] : memref<144x256xbf16, #tpu.memory_space<vmem>>, vector<16x256xbf16>
    tpu.vector_store %arg9[%c48_52, %c0_53], %45 {strides = array<i32>} : memref<144x256xbf16, #tpu.memory_space<vmem>>, vector<16x256xbf16>,
    %c0_54 = arith.constant 0 : index
    %c18_55 = arith.constant 18 : index
    %47 = vector.load %arg8[%c0_54, %c18_55] : memref<16x384xbf16, #tpu.memory_space<vmem>>, vector<16x256xbf16>
    %c64_56 = arith.constant 64 : index
    %c0_57 = arith.constant 0 : index
    %48 = vector.load %arg9[%c64_56, %c0_57] : memref<144x256xbf16, #tpu.memory_space<vmem>>, vector<16x256xbf16>
    tpu.vector_store %arg9[%c64_56, %c0_57], %47 {strides = array<i32>} : memref<144x256xbf16, #tpu.memory_space<vmem>>, vector<16x256xbf16>,
    %c0_58 = arith.constant 0 : index
    %c20 = arith.constant 20 : index
    %49 = vector.load %arg8[%c0_58, %c20] : memref<16x384xbf16, #tpu.memory_space<vmem>>, vector<16x256xbf16>
    %c80_59 = arith.constant 80 : index
    %c0_60 = arith.constant 0 : index
    %50 = vector.load %arg9[%c80_59, %c0_60] : memref<144x256xbf16, #tpu.memory_space<vmem>>, vector<16x256xbf16>
    tpu.vector_store %arg9[%c80_59, %c0_60], %49 {strides = array<i32>} : memref<144x256xbf16, #tpu.memory_space<vmem>>, vector<16x256xbf16>,
    %c0_61 = arith.constant 0 : index
    %c32_62 = arith.constant 32 : index
    %51 = vector.load %arg8[%c0_61, %c32_62] : memref<16x384xbf16, #tpu.memory_space<vmem>>, vector<16x256xbf16>
    %c96_63 = arith.constant 96 : index
    %c0_64 = arith.constant 0 : index
    %52 = vector.load %arg9[%c96_63, %c0_64] : memref<144x256xbf16, #tpu.memory_space<vmem>>, vector<16x256xbf16>
    tpu.vector_store %arg9[%c96_63, %c0_64], %51 {strides = array<i32>} : memref<144x256xbf16, #tpu.memory_space<vmem>>, vector<16x256xbf16>,
    %c0_65 = arith.constant 0 : index
    %c34 = arith.constant 34 : index
    %53 = vector.load %arg8[%c0_65, %c34] : memref<16x384xbf16, #tpu.memory_space<vmem>>, vector<16x256xbf16>
    %c112_66 = arith.constant 112 : index
    %c0_67 = arith.constant 0 : index
    %54 = vector.load %arg9[%c112_66, %c0_67] : memref<144x256xbf16, #tpu.memory_space<vmem>>, vector<16x256xbf16>
    tpu.vector_store %arg9[%c112_66, %c0_67], %53 {strides = array<i32>} : memref<144x256xbf16, #tpu.memory_space<vmem>>, vector<16x256xbf16>,
    %c0_68 = arith.constant 0 : index
    %c36 = arith.constant 36 : index
    %55 = vector.load %arg8[%c0_68, %c36] : memref<16x384xbf16, #tpu.memory_space<vmem>>, vector<16x256xbf16>
    %c128_69 = arith.constant 128 : index
    %c0_70 = arith.constant 0 : index
    %56 = vector.load %arg9[%c128_69, %c0_70] : memref<144x256xbf16, #tpu.memory_space<vmem>>, vector<16x256xbf16>
    tpu.vector_store %arg9[%c128_69, %c0_70], %55 {strides = array<i32>} : memref<144x256xbf16, #tpu.memory_space<vmem>>, vector<16x256xbf16>,
    %c0_71 = arith.constant 0 : index
    %c0_72 = arith.constant 0 : index
    %57 = vector.load %arg4[%c0_71, %c0_72] : memref<8x144xbf16, #tpu.memory_space<vmem>>, vector<8x144xbf16>
    %c0_73 = arith.constant 0 : index
    %c0_74 = arith.constant 0 : index
    %58 = vector.load %arg9[%c0_73, %c0_74] : memref<144x256xbf16, #tpu.memory_space<vmem>>, vector<144x256xbf16>
    %cst_75 = arith.constant dense<0.000000e+00> : vector<8x256xf32>
    %59 = tpu.matmul %57, %58, %cst_75 {dimension_numbers = #tpu.dot_dimension_numbers<[1], [0], [0], [1], [0, 0, 1, 1], [], []>} : vector<8x144xbf16>, vector<144x256xbf16>, vector<8x256xf32> -> vector<8x256xf32>
    %c0_76 = arith.constant 0 : index
    %c0_77 = arith.constant 0 : index
    %60 = vector.load %arg5[%c0_76, %c0_77] : memref<8x1xf32, #tpu.memory_space<vmem>>, vector<8x1xf32>
    %61 = vector.broadcast %60 : vector<8x1xf32> to vector<8x256xf32>
    %62 = arith.addf %59, %61 : vector<8x256xf32>
    %cst_78 = arith.constant 0.000000e+00 : f32
    %63 = vector.broadcast %cst_78 : f32 to vector<8x256xf32>
    %64 = arith.maximumf %62, %63 : vector<8x256xf32>
    %65 = arith.truncf %64 : vector<8x256xf32> to vector<8x256xbf16>
    %66 = vector.extract_strided_slice %65 {offsets = [0, 0], sizes = [8, 128], strides = [1, 1]} : vector<8x256xbf16> to vector<8x128xbf16>
    %c0_79 = arith.constant 0 : index
    %c0_80 = arith.constant 0 : index
    %c0_81 = arith.constant 0 : index
    %67 = vector.load %arg7[%c0_79, %c0_80, %c0_81] : memref<2x8x128xbf16, #tpu.memory_space<vmem>>, vector<1x8x128xbf16>
    %68 = vector.shape_cast %67 : vector<1x8x128xbf16> to vector<8x128xbf16>
    %69 = vector.shape_cast %66 : vector<8x128xbf16> to vector<1x8x128xbf16>
    tpu.vector_store %arg7[%c0_79, %c0_80, %c0_81], %69 {strides = array<i32>} : memref<2x8x128xbf16, #tpu.memory_space<vmem>>, vector<1x8x128xbf16>,
    %70 = vector.extract_strided_slice %65 {offsets = [0, 128], sizes = [8, 128], strides = [1, 1]} : vector<8x256xbf16> to vector<8x128xbf16>
    %c1_82 = arith.constant 1 : index
    %c0_83 = arith.constant 0 : index
    %c0_84 = arith.constant 0 : index
    %71 = vector.load %arg7[%c1_82, %c0_83, %c0_84] : memref<2x8x128xbf16, #tpu.memory_space<vmem>>, vector<1x8x128xbf16>
    %72 = vector.shape_cast %71 : vector<1x8x128xbf16> to vector<8x128xbf16>
    %73 = vector.shape_cast %70 : vector<8x128xbf16> to vector<1x8x128xbf16>
    tpu.vector_store %arg7[%c1_82, %c0_83, %c0_84], %73 {strides = array<i32>} : memref<2x8x128xbf16, #tpu.memory_space<vmem>>, vector<1x8x128xbf16>,
    return
  }
  func.func @transform_0(%arg0: i32) -> (i32, i32) {
    %c0_i32 = arith.constant 0 : i32
    %c0_i32_0 = arith.constant 0 : i32
    return %c0_i32, %arg0 : i32, i32
  }
  func.func @transform_1(%arg0: i32) -> (i32, i32) {
    %c0_i32 = arith.constant 0 : i32
    %c0_i32_0 = arith.constant 0 : i32
    %c0_i32_1 = arith.constant 0 : i32
    return %c0_i32, %c0_i32_0 : i32, i32
  }
  func.func @transform_2(%arg0: i32) -> (i32, i32) {
    %c0_i32 = arith.constant 0 : i32
    %c0_i32_0 = arith.constant 0 : i32
    %c0_i32_1 = arith.constant 0 : i32
    return %c0_i32, %c0_i32_0 : i32, i32
  }
  func.func @transform_3(%arg0: i32) -> (i32, i32) {
    %c0_i32 = arith.constant 0 : i32
    %c0_i32_0 = arith.constant 0 : i32
    %c0_i32_1 = arith.constant 0 : i32
    return %c0_i32, %c0_i32_0 : i32, i32
  }
  func.func @transform_4(%arg0: i32) -> (i32, i32) {
    %c0_i32 = arith.constant 0 : i32
    %c0_i32_0 = arith.constant 0 : i32
    %c0_i32_1 = arith.constant 0 : i32
    return %c0_i32, %c0_i32_0 : i32, i32
  }
  func.func @transform_5(%arg0: i32) -> (i32, i32, i32) {
    %c0_i32 = arith.constant 0 : i32
    %c0_i32_0 = arith.constant 0 : i32
    %c0_i32_1 = arith.constant 0 : i32
    return %arg0, %c0_i32, %c0_i32_0 : i32, i32, i32
  }
  func.func @transform_6(%arg0: i32) -> (i32, i32, i32) {
    %c0_i32 = arith.constant 0 : i32
    %c0_i32_0 = arith.constant 0 : i32
    %c0_i32_1 = arith.constant 0 : i32
    return %arg0, %c0_i32, %c0_i32_0 : i32, i32, i32
  }
}

</mosaic_0001>

<bundles_post_ra>
// kernel: tpu_custom_call.1
= control target key start
LH: loop header
LB: loop body
LE: loop exit
PB: predicated region body
PF: predicated region fallthrough
CT: control target
= control target key end

     0   :  { %12 = vsyncpa [#allocation5], 0  ;;  %s885_s0 = inlined_call_operand.vmem [shape: bf16[16,256], index: 0, kind: input, shape index: {}]   ;;  %s886_s1 = inlined_call_operand.hbm [shape: bf16[8,144], index: 1, kind: input, shape index: {}]   ;;  %s887_s2 = inlined_call_operand.vmem [shape: f32[8,1], index: 2, kind: input, shape index: {}]   ;;  %s888_s3 = inlined_call_operand.vmem [shape: bf16[8,144], index: 3, kind: input, shape index: {}]   ;;  %s889_s4 = inlined_call_operand.vmem [shape: f32[8,1], index: 4, kind: input, shape index: {}]   ;;  %s890_s5 = inlined_call_operand.hbm [shape: bf16[2,8,128], index: 5, kind: output, shape index: {0}]   ;;  %s891_s6 = inlined_call_operand.hbm [shape: bf16[2,8,128], index: 6, kind: output, shape index: {1}]  }
   0x1   :  { %13 = vsyncpa [#allocation6], 0 }
   0x2   :  { %14 = vsyncpa [#allocation9], 0  ;;  %s687_s21 = smov [#allocation4]   ;;  %s615_s25 = scalar_lea.hbm %s886_s1, 128 }
   0x3   :  { %s23_s22 = sshll.u32 %s687_s21, 4  ;;  %p616_p0 = scmp.ne.s32.totalorder %s886_s1, %s615_s25  ;;  %s24_s22 = int_to_ptr.vmem [resolvable:$true] %s23_s22 }
   0x4   :  { %p619_p1 = scmp.lt.u32.totalorder %s615_s25, %s886_s1 }
   0x6   :  { %p621_p2 = pnand %p619_p1, %p616_p0 }
   0x8   :  { %624 = shalt.err (!%p621_p2)
}
   0x9   :  { %s625_s30 = scalar_lea.vmem %s24_s22, 128  ;;  %p630_p4 = scmp.lt.s32.totalorder %s24_s22, %s24_s22 }
   0xa   :  { %p626_p3 = scmp.ne.s32.totalorder %s24_s22, %s625_s30  ;;  %p631_p5 = scmp.lt.s32.totalorder %s625_s30, %s625_s30 }
   0xc   :  { %p632_p6 = por %p631_p5, %p630_p4 }
   0xe   :  { %p633_p7 = pnand %p632_p6, %p626_p3 }
  0x10   :  { %636 = shalt.err (!%p633_p7)
}
  0x11   :  { %26 = dma.hbm_to_vmem [thread:$0]  %s886_s1, 128, %s24_s22, [#allocation5]  }
  0x12   :  { %681 = dma.done.wait [#allocation5], 128  }
  0x13   :  { %682 = vsyncadd [#allocation5], 4294967168  ;;  %v688_v0 = vmov 0   ;;  %s689_s9 = smov 127   ;;  %s690_s10 = smov 126   ;;  %v810_v3 = vld [vmem:[#allocation4] sm:$0xff] }
  0x14   :  { %66 = vrot.lane.b32.xlu0 %v688_v0, %s689_s9  ;;  %607 = vset.pattern.permute.xlu1 %v688_v0  ;;  %v760_v1 = vld [vmem:[%s885_s0 + $0x4] ss:$8 sps:$4 sm:$0xff]   ;;  %v767_v2 = vld [vmem:[%s885_s0] ss:$8 sps:$4 sm:$0xff]   ;;  %s691_s14 = smov 124   ;;  %s692_s0 = smov 120   ;;  %v562_v5 = vcombine.high %v810_v3, %v810_v3 }
  0x15   :  { %606 = vset.pattern.permute.xlu0 %v688_v0  ;;  %597 = vrot.lane.b32.xlu1 %v688_v0, %s690_s10  ;;  %s693_s15 = smov 112   ;;  %s694_s16 = smov 119   ;;  %v815_v4 = vld [vmem:[%s888_s3] sm:$0xff]  ;;  %vm239_vm0 = vcmask 130048   ;;  %vm68_vm1 = vcmask 1039360   ;;  %vm87_vm2 = vcmask 1031168  }
  0x16   :  { %243 = vmatprep.subr.bf16.mxu0 %v760_v1  ;;  %478 = vmatprep.subr.bf16.mxu1 %v760_v1  ;;  %s695_s17 = smov 110   ;;  %s696_s18 = smov 118   ;;  %v565_v6 = vcombine.high %v815_v4, %v815_v4  ;;  %v463_v7 = vld [vmem:[%s889_s4] sm:$0xff]  ;;  %vm325_vm3 = vcmask 1014784   ;;  %vm106_vm4 = vcmask 982016   ;;  %vm163_vm5 = vcmask 916480  }
  0x17   :  { %244 = vmatpush1.bf16.msra.mxu0 %v767_v2  ;;  %479 = vmatpush1.bf16.msra.mxu1 %v767_v2  ;;  %s697_s19 = smov 108   ;;  %s698_s20 = smov 96   ;;  %v227_v8 = vld [vmem:[%s887_s2] sm:$0xff]  ;;  %vm125_vm6 = vcmask 973824   ;;  %vm201_vm7 = vcmask 900096   ;;  %vm144_vm8 = vcmask 965632  }
  0x18   :  { %64 = vrot.lane.b32.xlu0 %v760_v1, %s689_s9  ;;  %s699_s21 = smov 111   ;;  %s700_s22 = smov 94   ;;  %563 = vmatprep.mubr.msk.bf16.mxu0 %vm239_vm0, %v562_v5  ;;  %vm380_vm9 = vcmask 883712   ;;  %vm399_vm10 = vcmask 785408   ;;  %vm182_vm11 = vcmask 908288   ;;  %vm418_vm12 = vcmask 769024  }
  0x19   :  { %303 = vrot.lane.b32.xlu1 %v760_v1, %s690_s10  ;;  %566 = vmatprep.mubr.msk.bf16.mxu1 %vm239_vm0, %v565_v6  ;;  %s701_s3 = smov 92   ;;  %vm437_vm13 = vcmask 752640   ;;  %s702_s2 = smov [#allocation7]  }
  0x1a   :  { %s531_s4 = sshll.u32 %s702_s2, 4  ;;  %s703_s29 = smov [#allocation8]   ;;  %s532_s4 = int_to_ptr.vmem [resolvable:$true] %s531_s4 }
  0x1b   :  { %s543_s30 = sshll.u32 %s703_s29, 4  ;;  %s637_s7 = scalar_lea.vmem %s532_s4, 128  ;;  %s854_s30 = int_to_ptr.vmem [resolvable:$true] %s543_s30 }
  0x1c   :  { %62 = vrot.lane.b32.xlu0 %v767_v2, %s689_s9  ;;  %p638_p8 = scmp.ne.s32.totalorder %s532_s4, %s637_s7  ;;  %p642_p9 = scmp.lt.s32.totalorder %s532_s4, %s532_s4 }
  0x1d   :  { %301 = vrot.lane.b32.xlu1 %v767_v2, %s690_s10  ;;  %p643_p10 = scmp.lt.s32.totalorder %s637_s7, %s637_s7 }
  0x1f   :  { %p644_p11 = por %p643_p10, %p642_p9 }
  0x20   :  { %83 = vrot.lane.b32.xlu0 %v760_v1, %s690_s10 }
  0x21   :  { %321 = vrot.lane.b32.xlu1 %v760_v1, %s691_s14  ;;  %p645_p12 = pnand %p644_p11, %p638_p8 }
  0x24   :  { %323 = vrot.lane.b32.xlu0 %v688_v0, %s691_s14 }
  0x25   :  { %81 = vrot.lane.b32.xlu1 %v767_v2, %s690_s10 }
  0x28   :  { %319 = vrot.lane.b32.xlu0 %v767_v2, %s691_s14 }
  0x29   :  { %102 = vrot.lane.b32.xlu1 %v760_v1, %s692_s0 }
  0x2c   :  { %104 = vrot.lane.b32.xlu0 %v688_v0, %s692_s0 }
  0x2d   :  { %340 = vrot.lane.b32.xlu1 %v760_v1, %s693_s15 }
  0x30   :  { %602 = vrot.lane.b32.xlu0 %v688_v0, %s693_s15 }
  0x31   :  { %100 = vrot.lane.b32.xlu1 %v767_v2, %s692_s0 }
  0x34   :  { %338 = vrot.lane.b32.xlu0 %v767_v2, %s693_s15 }
  0x35   :  { %121 = vrot.lane.b32.xlu1 %v760_v1, %s694_s16 }
  0x38   :  { %123 = vrot.lane.b32.xlu0 %v688_v0, %s694_s16 }
  0x39   :  { %358 = vrot.lane.b32.xlu1 %v760_v1, %s695_s17 }
  0x3c   :  { %360 = vrot.lane.b32.xlu0 %v688_v0, %s695_s17 }
  0x3d   :  { %119 = vrot.lane.b32.xlu1 %v767_v2, %s694_s16 }
  0x40   :  { %356 = vrot.lane.b32.xlu0 %v767_v2, %s695_s17 }
  0x41   :  { %140 = vrot.lane.b32.xlu1 %v760_v1, %s696_s18 }
  0x44   :  { %142 = vrot.lane.b32.xlu0 %v688_v0, %s696_s18 }
  0x45   :  { %376 = vrot.lane.b32.xlu1 %v760_v1, %s697_s19 }
  0x48   :  { %378 = vrot.lane.b32.xlu0 %v688_v0, %s697_s19 }
  0x49   :  { %138 = vrot.lane.b32.xlu1 %v767_v2, %s696_s18 }
  0x4c   :  { %374 = vrot.lane.b32.xlu0 %v767_v2, %s697_s19 }
  0x4d   :  { %159 = vrot.lane.b32.xlu1 %v760_v1, %s693_s15 }
  0x50   :  { %395 = vrot.lane.b32.xlu0 %v760_v1, %s698_s20 }
  0x51   :  { %397 = vrot.lane.b32.xlu1 %v688_v0, %s698_s20 }
  0x54   :  { %157 = vrot.lane.b32.xlu0 %v767_v2, %s693_s15 }
  0x55   :  { %393 = vrot.lane.b32.xlu1 %v767_v2, %s698_s20 }
  0x58   :  { %178 = vrot.lane.b32.xlu0 %v760_v1, %s699_s21 }
  0x59   :  { %180 = vrot.lane.b32.xlu1 %v688_v0, %s699_s21 }
  0x5c   :  { %414 = vrot.lane.b32.xlu0 %v760_v1, %s700_s22 }
  0x5d   :  { %416 = vrot.lane.b32.xlu1 %v688_v0, %s700_s22 }
  0x60   :  { %176 = vrot.lane.b32.xlu0 %v767_v2, %s699_s21 }
  0x61   :  { %412 = vrot.lane.b32.xlu1 %v767_v2, %s700_s22 }
  0x64   :  { %197 = vrot.lane.b32.xlu0 %v760_v1, %s695_s17 }
  0x65   :  { %199 = vrot.lane.b32.xlu1 %v688_v0, %s695_s17 }
  0x68   :  { %433 = vrot.lane.b32.xlu0 %v760_v1, %s701_s3 }
  0x69   :  { %435 = vrot.lane.b32.xlu1 %v688_v0, %s701_s3 }
  0x6c   :  { %195 = vrot.lane.b32.xlu0 %v767_v2, %s695_s17 }
  0x6d   :  { %431 = vrot.lane.b32.xlu1 %v767_v2, %s701_s3 }
  0x70   :  { %230 = vperm.xlu0 %606, %v227_v8  }
  0x71   :  { %466 = vperm.xlu1 %607, %v463_v7  }
  0x86   :  { %v67_v10 = vpop.permute.xlu0 %66 }
  0x87   :  { %v598_v9 = vpop.permute.xlu1 %597 }
  0x88   :  { %v599_v11 = vunpack.i.l.bf16 %v598_v9  ;;  %v600_v20 = vunpack.i.h.bf16 %v598_v9 }
  0x8a   :  { %v65_v13 = vpop.permute.xlu0 %64 }
  0x8b   :  { %v304_v12 = vpop.permute.xlu1 %303  ;;  %v70_v14 = vsel %vm68_vm1, %v65_v13, %v67_v10 }
  0x8c   :  { %v308_v15 = vsel %vm87_vm2, %v304_v12, %v599_v11  ;;  %245 = vmatprep.subr.bf16.mxu0 %v70_v14 }
  0x8d   :  { %480 = vmatprep.subr.bf16.mxu1 %v308_v15 }
  0x8e   :  { %v63_v17 = vpop.permute.xlu0 %62 }
  0x8f   :  { %v302_v16 = vpop.permute.xlu1 %301  ;;  %v69_v18 = vsel %vm68_vm1, %v63_v17, %v65_v13 }
  0x90   :  { %v307_v19 = vsel %vm87_vm2, %v302_v16, %v304_v12  ;;  %246 = vmatpush1.bf16.msra.mxu0 %v69_v18 }
  0x91   :  { %481 = vmatpush1.bf16.msra.mxu1 %v307_v19 }
  0x92   :  { %v84_v22 = vpop.permute.xlu0 %83 }
  0x93   :  { %v322_v21 = vpop.permute.xlu1 %321  ;;  %v89_v23 = vsel %vm87_vm2, %v84_v22, %v600_v20 }
  0x94   :  { %247 = vmatprep.subr.bf16.mxu0 %v89_v23 }
  0x96   :  { %v324_v25 = vpop.permute.xlu0 %323 }
  0x97   :  { %v82_v24 = vpop.permute.xlu1 %81  ;;  %v327_v27 = vsel %vm325_vm3, %v322_v21, %v324_v25 }
  0x98   :  { %v88_v26 = vsel %vm87_vm2, %v82_v24, %v84_v22  ;;  %482 = vmatprep.subr.bf16.mxu1 %v327_v27 }
  0x99   :  { %248 = vmatpush1.bf16.msra.mxu0 %v88_v26 }
  0x9a   :  { %v320_v29 = vpop.permute.xlu0 %319 }
  0x9b   :  { %v103_v28 = vpop.permute.xlu1 %102  ;;  %v326_v30 = vsel %vm325_vm3, %v320_v29, %v322_v21  ;;  %v561_v29 = vcombine.low %v810_v3, %v810_v3 }
  0x9c   :  { %483 = vmatpush1.bf16.msra.mxu1 %v326_v30  ;;  %v564_v30 = vcombine.low %v815_v4, %v815_v4 }
  0x9e   :  { %v105_v32 = vpop.permute.xlu0 %104 }
  0x9f   :  { %v341_v31 = vpop.permute.xlu1 %340  ;;  %v108_v33 = vsel %vm106_vm4, %v103_v28, %v105_v32 }
  0xa0   :  { %249 = vmatprep.subr.bf16.mxu0 %v108_v33 }
  0xa2   :  { %v603_v35 = vpop.permute.xlu0 %602 }
  0xa3   :  { %v101_v34 = vpop.permute.xlu1 %100  ;;  %v604_v36 = vunpack.i.l.bf16 %v603_v35  ;;  %v605_v59 = vunpack.i.h.bf16 %v603_v35 }
  0xa4   :  { %v107_v37 = vsel %vm106_vm4, %v101_v34, %v103_v28 }
  0xa5   :  { %250 = vmatpush1.bf16.msra.mxu0 %v107_v37  ;;  %v345_v38 = vsel %vm163_vm5, %v341_v31, %v604_v36 }
  0xa6   :  { %v339_v40 = vpop.permute.xlu0 %338  ;;  %484 = vmatprep.subr.bf16.mxu1 %v345_v38 }
  0xa7   :  { %v122_v39 = vpop.permute.xlu1 %121  ;;  %v344_v41 = vsel %vm163_vm5, %v339_v40, %v341_v31 }
  0xa8   :  { %485 = vmatpush1.bf16.msra.mxu1 %v344_v41 }
  0xaa   :  { %v124_v43 = vpop.permute.xlu0 %123 }
  0xab   :  { %v359_v42 = vpop.permute.xlu1 %358  ;;  %v127_v44 = vsel %vm125_vm6, %v122_v39, %v124_v43 }
  0xac   :  { %251 = vmatprep.subr.bf16.mxu0 %v127_v44 }
  0xae   :  { %v361_v46 = vpop.permute.xlu0 %360 }
  0xaf   :  { %v120_v45 = vpop.permute.xlu1 %119  ;;  %v363_v48 = vsel %vm201_vm7, %v359_v42, %v361_v46 }
  0xb0   :  { %v126_v47 = vsel %vm125_vm6, %v120_v45, %v122_v39  ;;  %486 = vmatprep.subr.bf16.mxu1 %v363_v48 }
  0xb1   :  { %252 = vmatpush1.bf16.msra.mxu0 %v126_v47 }
  0xb2   :  { %v357_v50 = vpop.permute.xlu0 %356 }
  0xb3   :  { %v141_v49 = vpop.permute.xlu1 %140  ;;  %v362_v51 = vsel %vm201_vm7, %v357_v50, %v359_v42 }
  0xb4   :  { %487 = vmatpush1.bf16.msra.mxu1 %v362_v51 }
  0xb6   :  { %v143_v53 = vpop.permute.xlu0 %142 }
  0xb7   :  { %v377_v52 = vpop.permute.xlu1 %376  ;;  %v146_v54 = vsel %vm144_vm8, %v141_v49, %v143_v53 }
  0xb8   :  { %253 = vmatprep.subr.bf16.mxu0 %v146_v54 }
  0xba   :  { %v379_v56 = vpop.permute.xlu0 %378 }
  0xbb   :  { %v139_v55 = vpop.permute.xlu1 %138  ;;  %v382_v58 = vsel %vm380_vm9, %v377_v52, %v379_v56 }
  0xbc   :  { %v145_v57 = vsel %vm144_vm8, %v139_v55, %v141_v49  ;;  %488 = vmatprep.subr.bf16.mxu1 %v382_v58 }
  0xbd   :  { %254 = vmatpush1.bf16.msra.mxu0 %v145_v57 }
  0xbe   :  { %v375_v61 = vpop.permute.xlu0 %374 }
  0xbf   :  { %v160_v60 = vpop.permute.xlu1 %159  ;;  %v381_v63 = vsel %vm380_vm9, %v375_v61, %v377_v52 }
  0xc0   :  { %v165_v62 = vsel %vm163_vm5, %v160_v60, %v605_v59  ;;  %489 = vmatpush1.bf16.msra.mxu1 %v381_v63 }
  0xc1   :  { %255 = vmatprep.subr.bf16.mxu0 %v165_v62 }
  0xc2   :  { %v396_v1 = vpop.permute.xlu0 %395 }
  0xc3   :  { %v398_v0 = vpop.permute.xlu1 %397 }
  0xc4   :  { %v401_v2 = vsel %vm399_vm10, %v396_v1, %v398_v0 }
  0xc5   :  { %490 = vmatprep.subr.bf16.mxu1 %v401_v2 }
  0xc6   :  { %v158_v6 = vpop.permute.xlu0 %157 }
  0xc7   :  { %v394_v5 = vpop.permute.xlu1 %393  ;;  %v164_v7 = vsel %vm163_vm5, %v158_v6, %v160_v60 }
  0xc8   :  { %v400_v8 = vsel %vm399_vm10, %v394_v5, %v396_v1  ;;  %256 = vmatpush1.bf16.msra.mxu0 %v164_v7 }
  0xc9   :  { %491 = vmatpush1.bf16.msra.mxu1 %v400_v8 }
  0xca   :  { %v179_v10 = vpop.permute.xlu0 %178 }
  0xcb   :  { %v181_v9 = vpop.permute.xlu1 %180 }
  0xcc   :  { %v184_v11 = vsel %vm182_vm11, %v179_v10, %v181_v9 }
  0xcd   :  { %257 = vmatprep.subr.bf16.mxu0 %v184_v11 }
  0xce   :  { %v415_v13 = vpop.permute.xlu0 %414 }
  0xcf   :  { %v417_v12 = vpop.permute.xlu1 %416 }
  0xd0   :  { %v420_v14 = vsel %vm418_vm12, %v415_v13, %v417_v12 }
  0xd1   :  { %492 = vmatprep.subr.bf16.mxu1 %v420_v14 }
  0xd2   :  { %v177_v16 = vpop.permute.xlu0 %176 }
  0xd3   :  { %v413_v15 = vpop.permute.xlu1 %412  ;;  %v183_v17 = vsel %vm182_vm11, %v177_v16, %v179_v10 }
  0xd4   :  { %v419_v18 = vsel %vm418_vm12, %v413_v15, %v415_v13  ;;  %258 = vmatpush1.bf16.msra.mxu0 %v183_v17 }
  0xd5   :  { %493 = vmatpush1.bf16.msra.mxu1 %v419_v18 }
  0xd6   :  { %v198_v20 = vpop.permute.xlu0 %197 }
  0xd7   :  { %v200_v19 = vpop.permute.xlu1 %199 }
  0xd8   :  { %v203_v21 = vsel %vm201_vm7, %v198_v20, %v200_v19 }
  0xd9   :  { %259 = vmatprep.subr.bf16.mxu0 %v203_v21 }
  0xda   :  { %v434_v23 = vpop.permute.xlu0 %433 }
  0xdb   :  { %v436_v22 = vpop.permute.xlu1 %435 }
  0xdc   :  { %v439_v24 = vsel %vm437_vm13, %v434_v23, %v436_v22 }
  0xdd   :  { %494 = vmatprep.subr.bf16.mxu1 %v439_v24 }
  0xde   :  { %v196_v26 = vpop.permute.xlu0 %195 }
  0xdf   :  { %v432_v25 = vpop.permute.xlu1 %431  ;;  %v202_v27 = vsel %vm201_vm7, %v196_v26, %v198_v20 }
  0xe0   :  { %v438_v28 = vsel %vm437_vm13, %v432_v25, %v434_v23  ;;  %260 = vmatpush1.bf16.msra.mxu0 %v202_v27 }
  0xe1   :  { %495 = vmatpush1.bf16.msra.mxu1 %v438_v28 }
  0xe3   :  { %276 = vmatmul.mubr.bf16.vlgmr.msra.gmra.mrb[0].mxu0 %v561_v29 }
  0xe4   :  { %511 = vmatmul.mubr.bf16.vlgmr.msra.gmra.mrb[0].mxu1 %v564_v30 }
  0xef   :  { %v231_v32 = vpop.permute.xlu0 %230 }
  0xf0   :  { %v467_v31 = vpop.permute.xlu1 %466 }
 0x1b6   :  { %v277_v33 = vpop.f32.mrb[0].mxu0 }
 0x1b7   :  { %v512_v34 = vpop.f32.mrb[0].mxu1  ;;  %v278_v35 = vadd.f32 %v277_v33, %v231_v32  ;;  %v279_v37 = vpop.f32.mrb[1].mxu0 }
 0x1b8   :  { %v513_v36 = vadd.f32 %v512_v34, %v467_v31  ;;  %v514_v38 = vpop.f32.mrb[1].mxu1  ;;  %v280_v39 = vadd.f32 %v279_v37, %v231_v32  ;;  %v281_v41 = vpop.f32.mrb[2].mxu0 }
 0x1b9   :  { %v515_v40 = vadd.f32 %v514_v38, %v467_v31  ;;  %v516_v42 = vpop.f32.mrb[2].mxu1  ;;  %v284_v3 = vmax.f32 %v278_v35, 0.0  ;;  %v282_v43 = vpop.f32.mrb[3].mxu0 }
 0x1ba   :  { %v519_v4 = vmax.f32 %v513_v36, 0.0  ;;  %v517_v44 = vpop.f32.mrb[3].mxu1  ;;  %v285_v45 = vmax.f32 %v280_v39, 0.0 }
 0x1bb   :  { %v520_v46 = vmax.f32 %v515_v40, 0.0 }
 0x1bc   :  { %v570_v47 = vpack.c.bf16 %v285_v45, %v284_v3 }
 0x1bd   :  { %v575_v48 = vpack.c.bf16 %v520_v46, %v519_v4 }
 0x1be   :  { %571 = vst [vmem:[#allocation7] sm:$0xff] %v570_v47  }
 0x1bf   :  { %576 = vst [vmem:[#allocation8] sm:$0xff] %v575_v48  }
 0x1c0   :  { %648 = shalt.err (!%p645_p12)
}
 0x1c1   :  { %s649_s10 = scalar_lea.hbm %s890_s5, 128 }
 0x1c2   :  { %p650_p13 = scmp.ne.s32.totalorder %s890_s5, %s649_s10  ;;  %p653_p0 = scmp.lt.u32.totalorder %s649_s10, %s890_s5 }
 0x1c4   :  { %p655_p1 = pnand %p653_p0, %p650_p13 }
 0x1c6   :  { %658 = shalt.err (!%p655_p1)
}
 0x1c7   :  { %s704_s14 = smov 64   ;;  %s705_s0 = smov 4  }
 0x1c8   :  { %537 = dma.vmem_to_hbm [thread:$0]  %s532_s4, 128, %s890_s5, [#allocation6], %s704_s14, %s704_s14, %s705_s0  }
 0x1c9   :  { %s659_s17 = scalar_lea.vmem %s854_s30, 128  ;;  %p664_p3 = scmp.lt.s32.totalorder %s854_s30, %s854_s30 }
 0x1ca   :  { %p660_p2 = scmp.ne.s32.totalorder %s854_s30, %s659_s17  ;;  %p665_p4 = scmp.lt.s32.totalorder %s659_s17, %s659_s17 }
 0x1cc   :  { %p666_p5 = por %p665_p4, %p664_p3 }
 0x1ce   :  { %p667_p6 = pnand %p666_p5, %p660_p2 }
 0x1d0   :  { %670 = shalt.err (!%p667_p6)
}
 0x1d1   :  { %s671_s20 = scalar_lea.hbm %s891_s6, 128 }
 0x1d2   :  { %p672_p7 = scmp.ne.s32.totalorder %s891_s6, %s671_s20  ;;  %p675_p8 = scmp.lt.u32.totalorder %s671_s20, %s891_s6 }
 0x1d4   :  { %p677_p9 = pnand %p675_p8, %p672_p7 }
 0x1d6   :  { %680 = shalt.err (!%p677_p9)
}
 0x1d7   :  { %549 = dma.vmem_to_hbm [thread:$0]  %s854_s30, 128, %s891_s6, [#allocation9], %s704_s14, %s704_s14, %s705_s0  }
 0x1d8   :  { %683 = dma.done.wait [#allocation6], 128  }
 0x1d9   :  { %684 = vsyncadd [#allocation6], 4294967168 }
 0x1da   :  { %685 = dma.done.wait [#allocation9], 128  }
 0x1db   :  { %686 = vsyncadd [#allocation9], 4294967168 }
 0x1dc   :  { %556 = vsyncpa [#allocation5], 1 }
 0x1dd   :  { %557 = vsyncpa [#allocation6], 1 }
 0x1de   :  { %558 = vsyncpa [#allocation9], 1 }

</bundles_post_ra>
